<compile_context>
chip_gen: v7x
topology: tpu7x:2x2x1
jax: 0.10.0
libtpu: 0.0.40
codegen_flags: <defaults>
</compile_context>

<pallas_src>
import numpy as np
import jax
import jax.numpy as jnp
from jax.experimental import pallas as pl
from jax.experimental.pallas import tpu as pltpu


def build_unpool_weight(pooling_list, channels_per_edge, dtype=np.float32):
    """Deterministic weight construction, identical to SkeletonUnpool.__init__.

    Only used for the correctness check against the original matmul semantics.
    """
    input_edge_num = len(pooling_list)
    output_edge_num = sum(len(t) for t in pooling_list)
    w = np.zeros(
        (output_edge_num * channels_per_edge, input_edge_num * channels_per_edge),
        dtype=dtype,
    )
    for i, pair in enumerate(pooling_list):
        for j in pair:
            for c in range(channels_per_edge):
                w[j * channels_per_edge + c, i * channels_per_edge + c] = 1.0
    return jnp.asarray(w)


def build_unpool_src_edges(pooling_list):
    """src[j] = pooled (input) edge whose channels output edge j copies.

    SkeletonUnpool's weight assigns exactly one source to every output edge,
    so the matmul is exactly this gather; assert it so semantics stay exact.
    """
    output_edge_num = sum(len(t) for t in pooling_list)
    src = [-1] * output_edge_num
    for i, pair in enumerate(pooling_list):
        for j in pair:
            assert 0 <= j < output_edge_num, "output edge index out of range"
            assert src[j] == -1, "output edge listed twice; weight not a pure selection"
            src[j] = i
    assert all(s >= 0 for s in src), "some output edge has no source"
    return src  # plain Python ints -> static slices in the kernel body


def _build_copy_runs(src_list, cpe):
    """Coalesce consecutive output edges whose sources are also consecutive.

    Returns tuples (out_row_start, in_row_start, n_rows) in channel-row units,
    so 1:1 stretches of the skeleton become one big (>=8-row) slab copy.
    """
    runs = []
    j, n = 0, len(src_list)
    while j < n:
        s = src_list[j]
        length = 1
        while j + length < n and src_list[j + length] == s + length:
            length += 1
        runs.append((j * cpe, s * cpe, length * cpe))
        j += length
    return tuple(runs)


def _make_unpool_kernel(copy_runs):
    def kernel(x_ref, o_ref):
        # x_ref: (B, K, TT) full input slab; o_ref: (B, M, TT) full output slab.
        # Static, fully-unrolled slice copies (zero-cost ref views, LLO-visible).
        for out_r, in_r, n_rows in copy_runs:
            o_ref[:, out_r:out_r + n_rows, :] = x_ref[:, in_r:in_r + n_rows, :]
    return kernel


def _vmem_slab_budget_bytes():
    """Per-step (input slab + output slab) byte budget, by TPU generation."""
    try:
        info = pltpu.get_tpu_info()
        cap = getattr(info, "vmem_capacity_bytes", None)
        if cap is not None and cap >= 96 * 1024 * 1024:
            return 16 * 1024 * 1024   # v5e / v6e: 128 MiB VMEM -> bigger time slabs
    except Exception:
        pass
    return 8 * 1024 * 1024            # v7x / unknown: keep double-buffered <= ~16 MiB


def _pick_time_tile(T, bytes_per_time_col, budget_bytes):
    """Largest lane-dense (multiple-of-128) TT dividing T within the budget;
    keeps >= 2 grid steps when possible so the parallel axis can shard (v7x)."""
    if T % 128 != 0:
        return T  # full-extent block is legal; caller padded if it was too big
    cap = max(128, (budget_bytes // max(bytes_per_time_col, 1)) // 128 * 128)
    tt = min(T, cap)
    while T % tt != 0:
        tt -= 128
    tt = max(tt, 128)
    if tt == T and T >= 256:
        t2 = (T // 2) // 128 * 128
        while t2 >= 128 and T % t2 != 0:
            t2 -= 128
        if t2 >= 128:
            tt = t2
    return tt


def skeleton_unpool(x, pooling_list, channels_per_edge):
    """out[b] = W @ x[b] for the SkeletonUnpool selection matrix (copy fan-out)."""
    squeeze = False
    if x.ndim == 2:           # torch.matmul also accepts unbatched (K, T)
        x = x[None]
        squeeze = True
    B, K, T = x.shape
    cpe = int(channels_per_edge)
    in_edges = K // cpe
    assert in_edges * cpe == K, "K must be in_edge_num * channels_per_edge"
    assert in_edges == len(pooling_list), "pooling_list inconsistent with input"

    src = build_unpool_src_edges(pooling_list)
    out_edges = len(src)
    M = out_edges * cpe
    itemsize = jnp.dtype(x.dtype).itemsize

    budget = _vmem_slab_budget_bytes()
    bytes_per_col = B * (K + M) * itemsize

    # If T is not a multiple of 128 AND a single full-T slab would blow the
    # budget, pad time to the next multiple of 128 so it can be tiled.
    T_run = T
    if T % 128 != 0 and bytes_per_col * T > budget:
        T_run = ((T + 127) // 128) * 128
        x = jnp.pad(x, ((0, 0), (0, 0), (0, T_run - T)))

    TT = _pick_time_tile(T_run, bytes_per_col, budget)
    n_t = T_run // TT

    kernel = _make_unpool_kernel(_build_copy_runs(src, cpe))

    # Right-sized VMEM limit: double-buffered (in slab + out slab) + headroom.
    in_block = B * K * TT * itemsize
    out_block = B * M * TT * itemsize
    vmem_limit = int(
        min(max(2 * (in_block + out_block) + 2 * 1024 * 1024, 8 * 1024 * 1024),
            32 * 1024 * 1024)
    )

    out = pl.pallas_call(
        kernel,
        out_shape=jax.ShapeDtypeStruct((B, M, T_run), x.dtype),
        grid=(n_t,),
        in_specs=[pl.BlockSpec((B, K, TT), lambda t: (0, 0, t))],
        out_specs=pl.BlockSpec((B, M, TT), lambda t: (0, 0, t)),
        compiler_params=pltpu.CompilerParams(
            dimension_semantics=("parallel",),
            vmem_limit_bytes=vmem_limit,
        ),
        # Memory-bound pure copy: each input byte read once, each output byte
        # written once -> bytes = in + out, zero flops.
        cost_estimate=pl.CostEstimate(
            flops=0,
            transcendentals=0,
            bytes_accessed=B * (K + M) * T_run * itemsize,
        ),
    )(x)

    if T_run != T:
        out = out[:, :, :T]
    return out[0] if squeeze else out


if __name__ == "__main__":
    # Small synthetic skeleton: 3 pooled edges unpool to 6 edges, 4 channels/edge.
    pooling_list = [[0, 1], [2], [3, 4, 5]]
    channels_per_edge = 4
    weight = build_unpool_weight(pooling_list, channels_per_edge)   # (24, 12)

    B, T = 2, 256
    K = len(pooling_list) * channels_per_edge  # 12
    key = jax.random.PRNGKey(0)
    x = jax.random.normal(key, (B, K, T), dtype=jnp.float32)

    out = skeleton_unpool(x, pooling_list, channels_per_edge)
    out = jax.block_until_ready(out)

    # Correctness check against the original module semantics: torch.matmul(W, x).
    ref = jnp.einsum("mk,bkt->bmt", weight, x)
    np.testing.assert_allclose(np.asarray(out), np.asarray(ref), rtol=1e-6, atol=1e-6)

    print("KERNEL_OK")
</pallas_src>

<mosaic_0001>
module attributes {stable_mosaic.version = 11 : i64} {
  func.func @kernel(%arg0: i32, %arg1: memref<2x12x128xf32, #tpu.memory_space<vmem>>, %arg2: memref<2x24x128xf32, #tpu.memory_space<vmem>>) attributes {dimension_semantics = [#tpu.dimension_semantics<parallel>], iteration_bounds = array<i64: 2>, scalar_prefetch = 0 : i64, scratch_operands = 0 : i64, tpu.core_type = #tpu.core_type<tc>, window_params = [{transform_indices = @transform_0, window_bounds = array<i64: 2, 12, 128>}, {transform_indices = @transform_1, window_bounds = array<i64: 2, 24, 128>}]} {
    %c0 = arith.constant 0 : index
    %c0_0 = arith.constant 0 : index
    %c0_1 = arith.constant 0 : index
    %0 = vector.load %arg1[%c0, %c0_0, %c0_1] : memref<2x12x128xf32, #tpu.memory_space<vmem>>, vector<2x4x128xf32>
    %c0_2 = arith.constant 0 : index
    %c0_3 = arith.constant 0 : index
    %c0_4 = arith.constant 0 : index
    %1 = vector.load %arg2[%c0_2, %c0_3, %c0_4] : memref<2x24x128xf32, #tpu.memory_space<vmem>>, vector<2x4x128xf32>
    tpu.vector_store %arg2[%c0_2, %c0_3, %c0_4], %0 {strides = array<i32>} : memref<2x24x128xf32, #tpu.memory_space<vmem>>, vector<2x4x128xf32>,
    %c0_5 = arith.constant 0 : index
    %c0_6 = arith.constant 0 : index
    %c0_7 = arith.constant 0 : index
    %2 = vector.load %arg1[%c0_5, %c0_6, %c0_7] : memref<2x12x128xf32, #tpu.memory_space<vmem>>, vector<2x12x128xf32>
    %c0_8 = arith.constant 0 : index
    %c4 = arith.constant 4 : index
    %c0_9 = arith.constant 0 : index
    %3 = vector.load %arg2[%c0_8, %c4, %c0_9] : memref<2x24x128xf32, #tpu.memory_space<vmem>>, vector<2x12x128xf32>
    tpu.vector_store %arg2[%c0_8, %c4, %c0_9], %2 {strides = array<i32>} : memref<2x24x128xf32, #tpu.memory_space<vmem>>, vector<2x12x128xf32>,
    %c0_10 = arith.constant 0 : index
    %c8 = arith.constant 8 : index
    %c0_11 = arith.constant 0 : index
    %4 = vector.load %arg1[%c0_10, %c8, %c0_11] : memref<2x12x128xf32, #tpu.memory_space<vmem>>, vector<2x4x128xf32>
    %c0_12 = arith.constant 0 : index
    %c16 = arith.constant 16 : index
    %c0_13 = arith.constant 0 : index
    %5 = vector.load %arg2[%c0_12, %c16, %c0_13] : memref<2x24x128xf32, #tpu.memory_space<vmem>>, vector<2x4x128xf32>
    tpu.vector_store %arg2[%c0_12, %c16, %c0_13], %4 {strides = array<i32>} : memref<2x24x128xf32, #tpu.memory_space<vmem>>, vector<2x4x128xf32>,
    %c0_14 = arith.constant 0 : index
    %c8_15 = arith.constant 8 : index
    %c0_16 = arith.constant 0 : index
    %6 = vector.load %arg1[%c0_14, %c8_15, %c0_16] : memref<2x12x128xf32, #tpu.memory_space<vmem>>, vector<2x4x128xf32>
    %c0_17 = arith.constant 0 : index
    %c20 = arith.constant 20 : index
    %c0_18 = arith.constant 0 : index
    %7 = vector.load %arg2[%c0_17, %c20, %c0_18] : memref<2x24x128xf32, #tpu.memory_space<vmem>>, vector<2x4x128xf32>
    tpu.vector_store %arg2[%c0_17, %c20, %c0_18], %6 {strides = array<i32>} : memref<2x24x128xf32, #tpu.memory_space<vmem>>, vector<2x4x128xf32>,
    return
  }
  func.func @transform_0(%arg0: i32) -> (i32, i32, i32) {
    %c0_i32 = arith.constant 0 : i32
    %c0_i32_0 = arith.constant 0 : i32
    %c0_i32_1 = arith.constant 0 : i32
    return %c0_i32, %c0_i32_0, %arg0 : i32, i32, i32
  }
  func.func @transform_1(%arg0: i32) -> (i32, i32, i32) {
    %c0_i32 = arith.constant 0 : i32
    %c0_i32_0 = arith.constant 0 : i32
    %c0_i32_1 = arith.constant 0 : i32
    return %c0_i32, %c0_i32_0, %arg0 : i32, i32, i32
  }
}

</mosaic_0001>

<bundles_post_ra>
// kernel: tpu_custom_call.1
= control target key start
LH: loop header
LB: loop body
LE: loop exit
PB: predicated region body
PF: predicated region fallthrough
CT: control target
= control target key end

     0   :  { %6 = vsyncpa [#allocation4], 0  ;;  %s505_s0 = inlined_call_operand.vmem [shape: f32[2,12,256], index: 0, kind: input, shape index: {}]   ;;  %s506_s1 = inlined_call_operand.hbm [shape: f32[2,24,256], index: 1, kind: output, shape index: {}]  }
   0x1   :  { %8 = vsyncpa [#allocation4 + $0x1], 0  ;;  %s393_s6 = smov 0   ;;  %s395_s7 = smov 0  }
   0x2   :  { %s397_s8 = smov 0   ;;  %s399_s9 = smov 0  }
   0x3 LB: > { %s261_s10 = sadd.s32 4294967295, %s377_s9   ;;  %s262_s11 = sadd.s32 4294967294, %s377_s9   ;;  %s377_s9 = sphi %s399_s9, %s512_s9   ;;  %s373_s8 = sphi %s397_s8, %s511_s8   ;;  %s369_s7 = sphi %s395_s7, %s510_s7   ;;  %s365_s6 = sphi %s393_s6, %s509_s6  }
   0x4   : > { %s416_s12 = sadd.s32 1, %s377_s9   ;;  %s21_s13 = sadd.s32 1, %s373_s8 }
   0x5   : > { %s18_s14 = ssub.s32 %s377_s9, %s416_s12  ;;  %p28_p0 = scmp.ne.s32.totalorder %s373_s8, %s369_s7 }
   0x6   : > { %p19_p1 = scmp.eq.s32.totalorder %s18_s14, 0  ;;  %p29_p2 = scmp.eq.s32.totalorder %s377_s9, 0 }
   0x7   : > { %p58_p3 = scmp.eq.s32.totalorder %s261_s10, 1  ;;  %p63_p4 = scmp.ne.s32.totalorder %s369_s7, %s365_s6 }
   0x8   : > { %s429_s15 = scalar_select %p19_p1, %s373_s8, %s21_s13  }
   0x9   : > { %p30_p5 = por %p29_p2, %p28_p0  ;;  %p431_p6 = por %p58_p3, %p28_p0 }
   0xa   : > { %p64_p7 = scmp.eq.s32.totalorder %s262_s11, 1  ;;  %p264_p9 = scmp.ge.s32.totalorder %s377_s9, 2 }
   0xc   : > { %p435_p8 = por %p64_p7, %p63_p4  ;;  %80 = sbr.rel (%p264_p9) target bundleno = 26 (0x1a), region = 16 }
  0x13   : > { %83 = sbr.rel (!%p30_p5) target bundleno = 26 (0x1a), region = 20  ;;  %s85_s18 = sand.u32 (%p30_p5), 1, %s373_s8  }
  0x14   : > { %s266_s19 = sshll.u32 (%p30_p5), %s377_s9, 3  ;;  %s265_s20 = sshll.u32 (%p30_p5), %s85_s18, 5 }
  0x15   : > { %s89_s23 = scalar_lea.vmem (%p30_p5), %s505_s0, %s266_s19  ;;  %s87_s24 = scalar_lea.vmem (%p30_p5), [#allocation2], %s265_s20 }
  0x16   : > { %v123_v0 = vld [vmem:[%s89_s23] sm:$0xff] (%p30_p5)  ;;  %v125_v1 = vld [vmem:[%s89_s23 + $0x10] sm:$0xff] (%p30_p5) }
  0x17   : > { %v127_v2 = vld [vmem:[%s89_s23 + $0x20] sm:$0xff] (%p30_p5)  ;;  %124 = vst [vmem:[%s87_s24] sm:$0xff] (%p30_p5), %v123_v0  ;;  %126 = vst [vmem:[%s87_s24 + $0x8] sm:$0xff] (%p30_p5), %v125_v1  ;;  %v129_v3 = vld [vmem:[%s89_s23 + $0x30] sm:$0xff] (%p30_p5) }
  0x18   : > { %128 = vst [vmem:[%s87_s24 + $0x10] sm:$0xff] (%p30_p5), %v127_v2  ;;  %130 = vst [vmem:[%s87_s24 + $0x18] sm:$0xff] (%p30_p5), %v129_v3 }
  0x1a PF: > { %p267_p10 = scmp.ge.s32.totalorder %s377_s9, 1  ;;  %p135_p11 = scmp.lt.s32.totalorder %s377_s9, 3 }
  0x1c   : > { %p136_p12 = pnand %p267_p10, %p135_p11 }
  0x1d   : > { %s450_s25 = sand.u32 (!%p136_p12), 1, %s369_s7   ;;  %s269_s26 = sshll.u32 (!%p136_p12), %s261_s10, 7 }
  0x1e   : > { %139 = sbr.rel (%p136_p12) target bundleno = 61 (0x3d), region = 58  ;;  %s268_s27 = sshll.u32 (!%p136_p12), %s450_s25, 5 }
  0x1f   : > { %s272_s28 = smul.u32 (!%p136_p12), 48, %s450_s25  ;;  %s144_s29 = scalar_lea.vmem (!%p136_p12), [#allocation2], %s268_s27 }
  0x20   : > { %v161_v4 = vld [vmem:[%s144_s29] sm:$0xf] (!%p136_p12)  ;;  %v162_v5 = vld [vmem:[%s144_s29 + $0x10] sm:$0xf] (!%p136_p12)  ;;  %v166_v7 = vld [vmem:[%s144_s29 + $0x8] sm:$0xf] (!%p136_p12)  ;;  %s461_s5 = scalar_lea.hbm (!%p136_p12), %s506_s1, %s269_s26 }
  0x21   : > { %v165_v6 = vld [vmem:[%s144_s29] sm:$0xff] (!%p136_p12)  ;;  %s160_s30 = scalar_lea.vmem (!%p136_p12), [#allocation3], %s272_s28  ;;  %v167_v8 = vld [vmem:[%s144_s29 + $0x10] sm:$0xff] (!%p136_p12)  ;;  %v168_v9 = vld [vmem:[%s144_s29 + $0x18] sm:$0xf] (!%p136_p12)  ;;  %s182_s10 = scalar_lea.sflag (!%p136_p12), [#allocation4], %s450_s25 }
  0x22   : > { %163 = vst [vmem:[%s160_s30] sm:$0xf] (!%p136_p12), %v161_v4  ;;  %s194_s2 = sshll.u32 (!%p136_p12), %s160_s30, 4  ;;  %164 = vst [vmem:[%s160_s30 + $0x18] sm:$0xf] (!%p136_p12), %v162_v5  ;;  %v173_v10 = vld [vmem:[%s144_s29 + $0x8] sm:$0xf] (!%p136_p12)  ;;  %s456_s2 = int_to_ptr.vmem [resolvable:$true] %s194_s2 }
  0x23   : > { %169 = vst [vmem:[%s160_s30 + $0x4] sm:$0xff] (!%p136_p12), %v165_v6  ;;  %170 = vst [vmem:[%s160_s30 + $0xc] sm:$0xf] (!%p136_p12), %v166_v7  ;;  %v174_v11 = vld [vmem:[%s144_s29 + $0x18] sm:$0xf] (!%p136_p12)  ;;  %s315_s11 = scalar_lea.vmem (!%p136_p12), %s456_s2, 768 }
  0x24   : > { %171 = vst [vmem:[%s160_s30 + $0x1c] sm:$0xff] (!%p136_p12), %v167_v8  ;;  %172 = vst [vmem:[%s160_s30 + $0x24] sm:$0xf] (!%p136_p12), %v168_v9  ;;  %v177_v12 = vld [vmem:[%s144_s29 + $0x8] sm:$0xf] (!%p136_p12)  ;;  %p316_p13 = scmp.ne.s32.totalorder (!%p136_p12), %s456_s2, %s315_s11  ;;  %s379_s13 = smov (!%p136_p12), [#allocation3]  }
  0x25   : > { %175 = vst [vmem:[%s160_s30 + $0x10] sm:$0xf] %v173_v10  ;;  %176 = vst [vmem:[%s160_s30 + $0x28] sm:$0xf] %v174_v11  ;;  %v178_v13 = vld [vmem:[%s144_s29 + $0x18] sm:$0xf] }
  0x26   : > { %179 = vst [vmem:[%s160_s30 + $0x14] sm:$0xf] %v177_v12  ;;  %180 = vst [vmem:[%s160_s30 + $0x2c] sm:$0xf] %v178_v13  ;;  %p317_p0 = pnand %p316_p13, %p431_p6  ;;  %s319_s14 = sshll.u32 %s379_s13, 4  ;;  %s320_s14 = int_to_ptr.vmem [resolvable:$false] %s319_s14 }
  0x27   : > { %s321_s18 = scalar_lea.vmem %s320_s14, 1536  ;;  %p322_p2 = scmp.lt.s32.totalorder %s456_s2, %s320_s14 }
  0x28   : > { %p318_p1 = pneg %p317_p0  ;;  %p323_p3 = scmp.lt.s32.totalorder %s321_s18, %s315_s11 }
  0x2a   : > { %p324_p4 = por %p323_p3, %p322_p2 }
  0x2c   : > { %p325_p5 = pnand %p324_p4, %p318_p1 }
  0x2e   : > { %328 = shalt.err (!%p325_p5)
}
  0x2f   : > { %s329_s19 = scalar_lea.hbm %s461_s5, 768  ;;  %s333_s22 = scalar_lea.hbm %s506_s1, 1536 }
  0x30   : > { %p330_p7 = scmp.ne.s32.totalorder %s461_s5, %s329_s19  ;;  %p334_p12 = scmp.lt.u32.totalorder %s461_s5, %s506_s1 }
  0x31   : > { %p335_p13 = scmp.lt.u32.totalorder %s333_s22, %s329_s19  ;;  %p337_p1 = scmp.lt.u32.totalorder %s329_s19, %s461_s5 }
  0x32   : > { %p331_p10 = pnand %p330_p7, %p431_p6 }
  0x33   : > { %p336_p0 = por %p335_p13, %p334_p12 }
  0x34   : > { %p332_p11 = pneg %p331_p10 }
  0x35   : > { %p338_p2 = por %p337_p1, %p336_p0 }
  0x37   : > { %p339_p3 = pnand %p338_p2, %p332_p11 }
  0x39   : > { %342 = shalt.err (!%p339_p3)
}
  0x3a   : > { %s380_s26 = smov 128   ;;  %s381_s27 = smov 256  }
  0x3b   : > { %s382_s28 = smov 8  }
  0x3c   : > { %273 = dma.vmem_to_hbm [thread:$0]  (%p431_p6), %s456_s2, 768, %s461_s5, %s182_s10, %s380_s26, %s381_s27, %s382_s28  }
  0x3d PF: > { %s209_s29 = sand.u32 1, %s365_s6   ;;  %p276_p4 = pnand %p264_p9, %p435_p8 }
  0x3e   : > { %s210_s30 = scalar_lea.sflag [#allocation4], %s209_s29 }
  0x3f   : > { %360 = dma.done.wait (!%p276_p4), %s210_s30, 768  }
  0x40   : > { %362 = vsyncadd (!%p276_p4), %s210_s30, 4294966528  ;;  %p11_p5 = scmp.ge.s32.totalorder %s416_s12, 4   ;;  %s509_s6 = smov %s369_s7 }
  0x41   : > { %s510_s7 = smov %s373_s8  ;;  %s511_s8 = smov %s429_s15 }
  0x42   : > { %s512_s9 = smov %s416_s12  ;;  %13 = sbr.rel (!%p11_p5) target bundleno = 3 (0x3), region = 102 }
  0x49   :  { %215 = vsyncpa [#allocation4], 1 }
  0x4a   :  { %217 = vsyncpa [#allocation4 + $0x1], 1 }

</bundles_post_ra>
